<compile_context>
chip_gen: v7x
topology: tpu7x:2x2x1
jax: 0.10.0
libtpu: 0.0.40
codegen_flags: <defaults>
</compile_context>

<pallas_src>
import functools

import jax
import jax.numpy as jnp
from jax import lax
from jax.experimental import pallas as pl
from jax.experimental.pallas import tpu as pltpu

HIDDEN = 64      # fc1 / fc3 hidden width (from the module)
OUT_W = 128      # lane-dense output slab width (one full 128-lane vreg column)


def vae_kernel(xe_ref, w1_ref, wenc_ref, w3_ref, wdec_ref, b_ref, out_ref, *,
               input_dim, latent, cont_dim):
    xe = xe_ref[...]                      # [TB, input_dim + latent], f32
    x = xe[:, :input_dim]
    eps = xe[:, input_dim:]

    # ---- encode: h1 = relu(x @ W1 + b1)  (bf16 MXU, f32 accumulate) ----
    h1 = jnp.maximum(
        jnp.dot(x.astype(jnp.bfloat16), w1_ref[...],
                preferred_element_type=jnp.float32)
        + b_ref[0:1, :HIDDEN], 0.0)

    # ---- fused (mu || logvar) head: single [64, 2*latent] matmul ----
    enc = (jnp.dot(h1.astype(jnp.bfloat16), wenc_ref[...],
                   preferred_element_type=jnp.float32)
           + b_ref[1:2, :2 * latent])
    mu = enc[:, :latent]
    logvar = enc[:, latent:]

    # ---- reparameterize: z = mu + eps * exp(0.5 * logvar)  (f32) ----
    z = mu + eps * jnp.exp(0.5 * logvar)

    # ---- decode: h3 = relu(z @ W3 + b3) ----
    h3 = jnp.maximum(
        jnp.dot(z.astype(jnp.bfloat16), w3_ref[...],
                preferred_element_type=jnp.float32)
        + b_ref[2:3, :HIDDEN], 0.0)

    # ---- fused decoder heads (fc4 || cat heads || zero pad): single matmul ----
    dec_w = OUT_W - 2 * latent
    dec = (jnp.dot(h3.astype(jnp.bfloat16), wdec_ref[...],
                   preferred_element_type=jnp.float32)
           + b_ref[3:4, :dec_w])
    # sigmoid only on the continuous lanes; category logits pass through raw
    lane = lax.broadcasted_iota(jnp.int32, dec.shape, 1)
    dec = jnp.where(lane < cont_dim, jax.nn.sigmoid(dec), dec)

    # single lane-dense [TB, 128] store: [ dec(112) || mu(latent) || logvar(latent) ]
    out_ref[...] = jnp.concatenate([dec, enc], axis=-1)


def _pad_row(b):
    b = jnp.asarray(b, jnp.float32).reshape(1, -1)
    return jnp.pad(b, ((0, 0), (0, OUT_W - b.shape[1])))


def _choose_tb(B):
    """Batch tile: big tiles for large B, >=2 tiles for mid-size B (v7x dual TC)."""
    B8 = -(-B // 8) * 8
    if B8 <= 8:
        return 8
    if B8 >= 4096:
        return 2048
    return -(-(B8 // 2) // 8) * 8


def vae_forward(x, params, eps):
    """x: [B, num_fts + num_cats]; trailing columns hold integer category ids (as floats)."""
    emb_tables = params["emb_tables"]
    num_cats = len(emb_tables)
    num_fts = x.shape[1] - num_cats

    # glue: embedding lookups + concat (matches torch.cat([embedded_cats, x[:, :num_fts]]))
    embeds = [tbl[x[:, num_fts + i].astype(jnp.int32)]
              for i, tbl in enumerate(emb_tables)]
    inputs = jnp.concatenate(embeds + [x[:, :num_fts].astype(jnp.float32)], axis=1)

    B, input_dim = inputs.shape
    latent = params["wmu"].shape[1]
    cont_dim = params["w4"].shape[1]
    cat0_dim = params["wc0"].shape[1]
    cat1_dim = params["wc1"].shape[1]
    dec_real = cont_dim + cat0_dim + cat1_dim
    dec_pad = OUT_W - 2 * latent
    assert dec_real <= dec_pad, "decoder heads + 2*latent must fit one 128-lane slab"

    # ---- fuse encoder/decoder heads; pad decoder to lane-dense width; cast bf16 ----
    w1_bf = params["w1"].astype(jnp.bfloat16)                                 # [13, 64]
    w_enc = jnp.concatenate([params["wmu"], params["wls"]], axis=1)           # [64, 2L]
    w_enc = w_enc.astype(jnp.bfloat16)
    w_dec = jnp.concatenate([params["w4"], params["wc0"], params["wc1"]], 1)  # [64, 18]
    w_dec = jnp.pad(w_dec, ((0, 0), (0, dec_pad - dec_real)))                 # [64, 112]
    w_dec = w_dec.astype(jnp.bfloat16)
    w3_bf = params["w3"].astype(jnp.bfloat16)                                 # [L, 64]

    # ---- pack all biases into one [4, 128] f32 operand ----
    b_all = jnp.concatenate([
        _pad_row(params["b1"]),
        _pad_row(jnp.concatenate([params["bmu"].reshape(1, -1),
                                  params["bls"].reshape(1, -1)], axis=1)),
        _pad_row(params["b3"]),
        _pad_row(jnp.concatenate([params["b4"].reshape(1, -1),
                                  params["bc0"].reshape(1, -1),
                                  params["bc1"].reshape(1, -1)], axis=1)),
    ], axis=0)

    # ---- fuse inputs + eps into one narrow f32 operand (one DMA stream) ----
    xe = jnp.concatenate([inputs, eps.astype(jnp.float32)], axis=1)   # [B, in_dim + L]
    xe_w = input_dim + latent

    # ---- batch tiling ----
    TB = _choose_tb(B)
    B_pad = -(-B // TB) * TB
    if B_pad != B:
        xe = jnp.pad(xe, ((0, B_pad - B), (0, 0)))
    grid = (B_pad // TB,)

    flops = 2 * B_pad * (input_dim * HIDDEN + HIDDEN * 2 * latent
                         + latent * HIDDEN + HIDDEN * dec_pad)
    transcendentals = B_pad * (latent + cont_dim)
    bytes_accessed = int(4 * (xe.size + b_all.size + B_pad * OUT_W)
                         + 2 * (w1_bf.size + w_enc.size + w3_bf.size + w_dec.size))

    kernel = functools.partial(vae_kernel, input_dim=input_dim,
                               latent=latent, cont_dim=cont_dim)

    slab = pl.pallas_call(
        kernel,
        grid=grid,
        in_specs=[
            pl.BlockSpec((TB, xe_w), lambda i: (i, 0)),
            pl.BlockSpec((input_dim, HIDDEN), lambda i: (0, 0)),
            pl.BlockSpec((HIDDEN, 2 * latent), lambda i: (0, 0)),
            pl.BlockSpec((latent, HIDDEN), lambda i: (0, 0)),
            pl.BlockSpec((HIDDEN, dec_pad), lambda i: (0, 0)),
            pl.BlockSpec((4, OUT_W), lambda i: (0, 0)),
        ],
        out_specs=pl.BlockSpec((TB, OUT_W), lambda i: (i, 0)),
        out_shape=jax.ShapeDtypeStruct((B_pad, OUT_W), jnp.float32),
        compiler_params=pltpu.CompilerParams(
            dimension_semantics=("parallel",),
            vmem_limit_bytes=64 << 20),
        cost_estimate=pl.CostEstimate(
            flops=flops, transcendentals=transcendentals,
            bytes_accessed=bytes_accessed),
    )(xe, w1_bf, w_enc, w3_bf, w_dec, b_all)

    # slice the lane-dense slab back apart (plain JAX)
    out_cont = slab[:B, :cont_dim]
    cat0 = slab[:B, cont_dim:cont_dim + cat0_dim]
    cat1 = slab[:B, cont_dim + cat0_dim:dec_real]
    mu = slab[:B, dec_pad:dec_pad + latent]
    logvar = slab[:B, dec_pad + latent:dec_pad + 2 * latent]
    return out_cont, cat0, cat1, mu, logvar


def ref_forward(x, params, eps):
    """Pure-JAX reference (mirrors the PyTorch forward)."""
    emb_tables = params["emb_tables"]
    num_cats = len(emb_tables)
    num_fts = x.shape[1] - num_cats
    embeds = [tbl[x[:, num_fts + i].astype(jnp.int32)]
              for i, tbl in enumerate(emb_tables)]
    inputs = jnp.concatenate(embeds + [x[:, :num_fts]], axis=1)
    h1 = jnp.maximum(inputs @ params["w1"] + params["b1"], 0.0)
    mu = h1 @ params["wmu"] + params["bmu"]
    logvar = h1 @ params["wls"] + params["bls"]
    z = mu + eps * jnp.exp(0.5 * logvar)
    h3 = jnp.maximum(z @ params["w3"] + params["b3"], 0.0)
    out_cont = jax.nn.sigmoid(h3 @ params["w4"] + params["b4"])
    c0 = h3 @ params["wc0"] + params["bc0"]
    c1 = h3 @ params["wc1"] + params["bc1"]
    return out_cont, c0, c1, mu, logvar


if __name__ == "__main__":
    key = jax.random.PRNGKey(0)
    keys = jax.random.split(key, 16)

    # small shapes implied by the module
    B = 8
    cont_dim = 6                       # number of continuous features == fc4 out dim
    emb_specs = [(5, 3), (7, 4)]       # (num_categories, embedding_dim) per cat feature
    cats_out = [5, 7]                  # per-category output head sizes
    latent = 8
    input_dim = cont_dim + sum(d for _, d in emb_specs)   # 13

    def lin(k, fan_in, fan_out):
        kw, kb = jax.random.split(k)
        bound = 1.0 / float(fan_in) ** 0.5
        w = jax.random.uniform(kw, (fan_in, fan_out), jnp.float32, -bound, bound)
        b = jax.random.uniform(kb, (1, fan_out), jnp.float32, -bound, bound)
        return w, b

    params = {}
    params["emb_tables"] = [
        jax.random.normal(keys[0], emb_specs[0], jnp.float32),
        jax.random.normal(keys[1], emb_specs[1], jnp.float32),
    ]
    params["w1"], params["b1"] = lin(keys[2], input_dim, 64)
    params["wmu"], params["bmu"] = lin(keys[3], 64, latent)
    params["wls"], params["bls"] = lin(keys[4], 64, latent)
    params["w3"], params["b3"] = lin(keys[5], latent, 64)
    params["w4"], params["b4"] = lin(keys[6], 64, cont_dim)
    params["wc0"], params["bc0"] = lin(keys[7], 64, cats_out[0])
    params["wc1"], params["bc1"] = lin(keys[8], 64, cats_out[1])

    # x: [B, num_fts + num_cats]; trailing columns are category ids stored as floats
    # TODO(synk): pass ids as a separate int32 operand if tables ever exceed ~2^24 rows.
    cont_x = jax.random.normal(keys[9], (B, cont_dim), jnp.float32)
    cat_id0 = jax.random.randint(keys[10], (B, 1), 0, emb_specs[0][0]).astype(jnp.float32)
    cat_id1 = jax.random.randint(keys[11], (B, 1), 0, emb_specs[1][0]).astype(jnp.float32)
    x = jnp.concatenate([cont_x, cat_id0, cat_id1], axis=1)

    eps = jax.random.normal(keys[12], (B, latent), jnp.float32)

    outs = jax.block_until_ready(vae_forward(x, params, eps))
    refs = ref_forward(x, params, eps)

    # bf16 MXU inputs (f32 accumulate) -> slightly looser tolerance than pure f32
    for o, r in zip(outs, refs):
        assert o.shape == r.shape and o.dtype == jnp.float32
        assert jnp.allclose(o, r, rtol=2e-2, atol=2e-2), "mismatch vs reference"

    print("KERNEL_OK")
</pallas_src>

<mosaic_0001>
module attributes {stable_mosaic.version = 11 : i64} {
  func.func @vae_kernel(%arg0: i32, %arg1: memref<8x21xf32, #tpu.memory_space<vmem>>, %arg2: memref<13x64xbf16, #tpu.memory_space<vmem>>, %arg3: memref<64x16xbf16, #tpu.memory_space<vmem>>, %arg4: memref<8x64xbf16, #tpu.memory_space<vmem>>, %arg5: memref<64x112xbf16, #tpu.memory_space<vmem>>, %arg6: memref<4x128xf32, #tpu.memory_space<vmem>>, %arg7: memref<8x128xf32, #tpu.memory_space<vmem>>) attributes {dimension_semantics = [#tpu.dimension_semantics<parallel>], iteration_bounds = array<i64: 1>, scalar_prefetch = 0 : i64, scratch_operands = 0 : i64, tpu.core_type = #tpu.core_type<tc>, window_params = [{transform_indices = @transform_0, window_bounds = array<i64: 8, 21>}, {pipeline_mode = #tpu.pipeline_mode<synchronous>, transform_indices = @transform_1, window_bounds = array<i64: 13, 64>}, {pipeline_mode = #tpu.pipeline_mode<synchronous>, transform_indices = @transform_2, window_bounds = array<i64: 64, 16>}, {pipeline_mode = #tpu.pipeline_mode<synchronous>, transform_indices = @transform_3, window_bounds = array<i64: 8, 64>}, {pipeline_mode = #tpu.pipeline_mode<synchronous>, transform_indices = @transform_4, window_bounds = array<i64: 64, 112>}, {pipeline_mode = #tpu.pipeline_mode<synchronous>, transform_indices = @transform_5, window_bounds = array<i64: 4, 128>}, {transform_indices = @transform_6, window_bounds = array<i64: 8, 128>}]} {
    %c0 = arith.constant 0 : index
    %c0_0 = arith.constant 0 : index
    %0 = vector.load %arg1[%c0, %c0_0] : memref<8x21xf32, #tpu.memory_space<vmem>>, vector<8x21xf32>
    %1 = vector.extract_strided_slice %0 {offsets = [0, 0], sizes = [8, 13], strides = [1, 1]} : vector<8x21xf32> to vector<8x13xf32>
    %2 = vector.extract_strided_slice %0 {offsets = [0, 13], sizes = [8, 8], strides = [1, 1]} : vector<8x21xf32> to vector<8x8xf32>
    %3 = arith.truncf %1 : vector<8x13xf32> to vector<8x13xbf16>
    %c0_1 = arith.constant 0 : index
    %c0_2 = arith.constant 0 : index
    %4 = vector.load %arg2[%c0_1, %c0_2] : memref<13x64xbf16, #tpu.memory_space<vmem>>, vector<13x64xbf16>
    %cst = arith.constant dense<0.000000e+00> : vector<8x64xf32>
    %5 = tpu.matmul %3, %4, %cst {dimension_numbers = #tpu.dot_dimension_numbers<[1], [0], [0], [1], [0, 0, 1, 1], [], []>} : vector<8x13xbf16>, vector<13x64xbf16>, vector<8x64xf32> -> vector<8x64xf32>
    %c0_3 = arith.constant 0 : index
    %c0_4 = arith.constant 0 : index
    %6 = vector.load %arg6[%c0_3, %c0_4] : memref<4x128xf32, #tpu.memory_space<vmem>>, vector<1x64xf32>
    %7 = vector.broadcast %6 : vector<1x64xf32> to vector<8x64xf32>
    %8 = arith.addf %5, %7 : vector<8x64xf32>
    %cst_5 = arith.constant 0.000000e+00 : f32
    %9 = vector.broadcast %cst_5 : f32 to vector<8x64xf32>
    %10 = arith.maximumf %8, %9 : vector<8x64xf32>
    %11 = arith.truncf %10 : vector<8x64xf32> to vector<8x64xbf16>
    %c0_6 = arith.constant 0 : index
    %c0_7 = arith.constant 0 : index
    %12 = vector.load %arg3[%c0_6, %c0_7] : memref<64x16xbf16, #tpu.memory_space<vmem>>, vector<64x16xbf16>
    %cst_8 = arith.constant dense<0.000000e+00> : vector<8x16xf32>
    %13 = tpu.matmul %11, %12, %cst_8 {dimension_numbers = #tpu.dot_dimension_numbers<[1], [0], [0], [1], [0, 0, 1, 1], [], []>} : vector<8x64xbf16>, vector<64x16xbf16>, vector<8x16xf32> -> vector<8x16xf32>
    %c1 = arith.constant 1 : index
    %c0_9 = arith.constant 0 : index
    %14 = vector.load %arg6[%c1, %c0_9] : memref<4x128xf32, #tpu.memory_space<vmem>>, vector<1x16xf32>
    %15 = vector.broadcast %14 : vector<1x16xf32> to vector<8x16xf32>
    %16 = arith.addf %13, %15 : vector<8x16xf32>
    %17 = vector.extract_strided_slice %16 {offsets = [0, 0], sizes = [8, 8], strides = [1, 1]} : vector<8x16xf32> to vector<8x8xf32>
    %18 = vector.extract_strided_slice %16 {offsets = [0, 8], sizes = [8, 8], strides = [1, 1]} : vector<8x16xf32> to vector<8x8xf32>
    %cst_10 = arith.constant 5.000000e-01 : f32
    %19 = vector.broadcast %cst_10 : f32 to vector<8x8xf32>
    %20 = arith.mulf %19, %18 : vector<8x8xf32>
    %21 = math.exp %20 : vector<8x8xf32>
    %22 = arith.mulf %2, %21 : vector<8x8xf32>
    %23 = arith.addf %17, %22 : vector<8x8xf32>
    %24 = arith.truncf %23 : vector<8x8xf32> to vector<8x8xbf16>
    %c0_11 = arith.constant 0 : index
    %c0_12 = arith.constant 0 : index
    %25 = vector.load %arg4[%c0_11, %c0_12] : memref<8x64xbf16, #tpu.memory_space<vmem>>, vector<8x64xbf16>
    %cst_13 = arith.constant dense<0.000000e+00> : vector<8x64xf32>
    %26 = tpu.matmul %24, %25, %cst_13 {dimension_numbers = #tpu.dot_dimension_numbers<[1], [0], [0], [1], [0, 0, 1, 1], [], []>} : vector<8x8xbf16>, vector<8x64xbf16>, vector<8x64xf32> -> vector<8x64xf32>
    %c2 = arith.constant 2 : index
    %c0_14 = arith.constant 0 : index
    %27 = vector.load %arg6[%c2, %c0_14] : memref<4x128xf32, #tpu.memory_space<vmem>>, vector<1x64xf32>
    %28 = vector.broadcast %27 : vector<1x64xf32> to vector<8x64xf32>
    %29 = arith.addf %26, %28 : vector<8x64xf32>
    %cst_15 = arith.constant 0.000000e+00 : f32
    %30 = vector.broadcast %cst_15 : f32 to vector<8x64xf32>
    %31 = arith.maximumf %29, %30 : vector<8x64xf32>
    %32 = arith.truncf %31 : vector<8x64xf32> to vector<8x64xbf16>
    %c0_16 = arith.constant 0 : index
    %c0_17 = arith.constant 0 : index
    %33 = vector.load %arg5[%c0_16, %c0_17] : memref<64x112xbf16, #tpu.memory_space<vmem>>, vector<64x112xbf16>
    %cst_18 = arith.constant dense<0.000000e+00> : vector<8x112xf32>
    %34 = tpu.matmul %32, %33, %cst_18 {dimension_numbers = #tpu.dot_dimension_numbers<[1], [0], [0], [1], [0, 0, 1, 1], [], []>} : vector<8x64xbf16>, vector<64x112xbf16>, vector<8x112xf32> -> vector<8x112xf32>
    %c3 = arith.constant 3 : index
    %c0_19 = arith.constant 0 : index
    %35 = vector.load %arg6[%c3, %c0_19] : memref<4x128xf32, #tpu.memory_space<vmem>>, vector<1x112xf32>
    %36 = vector.broadcast %35 : vector<1x112xf32> to vector<8x112xf32>
    %37 = arith.addf %34, %36 : vector<8x112xf32>
    %38 = tpu.iota {dimensions = array<i32: 1>} : vector<8x112xi32>
    %c6_i32 = arith.constant 6 : i32
    %39 = vector.broadcast %c6_i32 : i32 to vector<8x112xi32>
    %40 = arith.cmpi slt, %38, %39 : vector<8x112xi32>
    %41 = arith.negf %37 : vector<8x112xf32>
    %42 = math.exp %41 : vector<8x112xf32>
    %cst_20 = arith.constant 1.000000e+00 : f32
    %43 = vector.broadcast %cst_20 : f32 to vector<8x112xf32>
    %44 = arith.addf %43, %42 : vector<8x112xf32>
    %45 = arith.divf %43, %44 : vector<8x112xf32>
    %46 = arith.select %40, %45, %37 : vector<8x112xi1>, vector<8x112xf32>
    %47 = tpu.concatenate %46, %16 in 1 : vector<8x112xf32>, vector<8x16xf32> -> vector<8x128xf32>
    %c0_21 = arith.constant 0 : index
    %c0_22 = arith.constant 0 : index
    %48 = vector.load %arg7[%c0_21, %c0_22] : memref<8x128xf32, #tpu.memory_space<vmem>>, vector<8x128xf32>
    tpu.vector_store %arg7[%c0_21, %c0_22], %47 {strides = array<i32>} : memref<8x128xf32, #tpu.memory_space<vmem>>, vector<8x128xf32>,
    return
  }
  func.func @transform_0(%arg0: i32) -> (i32, i32) {
    %c0_i32 = arith.constant 0 : i32
    %c0_i32_0 = arith.constant 0 : i32
    return %arg0, %c0_i32 : i32, i32
  }
  func.func @transform_1(%arg0: i32) -> (i32, i32) {
    %c0_i32 = arith.constant 0 : i32
    %c0_i32_0 = arith.constant 0 : i32
    %c0_i32_1 = arith.constant 0 : i32
    return %c0_i32, %c0_i32_0 : i32, i32
  }
  func.func @transform_2(%arg0: i32) -> (i32, i32) {
    %c0_i32 = arith.constant 0 : i32
    %c0_i32_0 = arith.constant 0 : i32
    %c0_i32_1 = arith.constant 0 : i32
    return %c0_i32, %c0_i32_0 : i32, i32
  }
  func.func @transform_3(%arg0: i32) -> (i32, i32) {
    %c0_i32 = arith.constant 0 : i32
    %c0_i32_0 = arith.constant 0 : i32
    %c0_i32_1 = arith.constant 0 : i32
    return %c0_i32, %c0_i32_0 : i32, i32
  }
  func.func @transform_4(%arg0: i32) -> (i32, i32) {
    %c0_i32 = arith.constant 0 : i32
    %c0_i32_0 = arith.constant 0 : i32
    %c0_i32_1 = arith.constant 0 : i32
    return %c0_i32, %c0_i32_0 : i32, i32
  }
  func.func @transform_5(%arg0: i32) -> (i32, i32) {
    %c0_i32 = arith.constant 0 : i32
    %c0_i32_0 = arith.constant 0 : i32
    %c0_i32_1 = arith.constant 0 : i32
    return %c0_i32, %c0_i32_0 : i32, i32
  }
  func.func @transform_6(%arg0: i32) -> (i32, i32) {
    %c0_i32 = arith.constant 0 : i32
    %c0_i32_0 = arith.constant 0 : i32
    return %arg0, %c0_i32 : i32, i32
  }
}

</mosaic_0001>

<bundles_post_ra>
// kernel: tpu_custom_call.1
= control target key start
LH: loop header
LB: loop body
LE: loop exit
PB: predicated region body
PF: predicated region fallthrough
CT: control target
= control target key end

     0   :  { %11 = vsyncpa [#allocation3], 0  ;;  %s859_s0 = inlined_call_operand.hbm [shape: f32[8,21], index: 0, kind: input, shape index: {}]   ;;  %s860_s1 = inlined_call_operand.hbm [shape: bf16[13,64], index: 1, kind: input, shape index: {}]   ;;  %s861_s2 = inlined_call_operand.hbm [shape: bf16[64,16], index: 2, kind: input, shape index: {}]   ;;  %s862_s3 = inlined_call_operand.hbm [shape: bf16[8,64], index: 3, kind: input, shape index: {}]   ;;  %s863_s4 = inlined_call_operand.hbm [shape: bf16[64,112], index: 4, kind: input, shape index: {}]   ;;  %s864_s5 = inlined_call_operand.hbm [shape: f32[4,128], index: 5, kind: input, shape index: {}]   ;;  %s865_s6 = inlined_call_operand.hbm [shape: f32[8,128], index: 6, kind: output, shape index: {}]  }
   0x1   :  { %12 = vsyncpa [#allocation6], 0 }
   0x2   :  { %13 = vsyncpa [#allocation9], 0 }
   0x3   :  { %14 = vsyncpa [#allocation12], 0 }
   0x4   :  { %15 = vsyncpa [#allocation4], 0  ;;  %s696_s21 = smov [#allocation5]   ;;  %s532_s25 = scalar_lea.hbm %s860_s1, 128 }
   0x5   :  { %s31_s22 = sshll.u32 %s696_s21, 4  ;;  %p533_p0 = scmp.ne.s32.totalorder %s860_s1, %s532_s25  ;;  %s32_s22 = int_to_ptr.vmem [resolvable:$true] %s31_s22 }
   0x6   :  { %p536_p1 = scmp.lt.u32.totalorder %s532_s25, %s860_s1 }
   0x8   :  { %p538_p2 = pnand %p536_p1, %p533_p0 }
   0xa   :  { %541 = shalt.err (!%p538_p2)
}
   0xb   :  { %s542_s30 = scalar_lea.vmem %s32_s22, 128  ;;  %p547_p4 = scmp.lt.s32.totalorder %s32_s22, %s32_s22 }
   0xc   :  { %p543_p3 = scmp.ne.s32.totalorder %s32_s22, %s542_s30  ;;  %p548_p5 = scmp.lt.s32.totalorder %s542_s30, %s542_s30 }
   0xe   :  { %p549_p6 = por %p548_p5, %p547_p4 }
  0x10   :  { %p550_p7 = pnand %p549_p6, %p543_p3 }
  0x12   :  { %553 = shalt.err (!%p550_p7)
}
  0x13   :  { %s697_s7 = smov 64   ;;  %s698_s8 = smov 4  }
  0x14   :  { %37 = dma.hbm_to_vmem [thread:$0]  %s860_s1, 128, %s32_s22, [#allocation6], %s697_s7, %s697_s7, %s698_s8  }
  0x15   :  { %s699_s11 = smov [#allocation8]   ;;  %s700_s13 = smov [#allocation2]  }
  0x16   :  { %s56_s12 = sshll.u32 %s699_s11, 4  ;;  %s22_s14 = sshll.u32 %s700_s13, 4  ;;  %s57_s12 = int_to_ptr.vmem [resolvable:$true] %s56_s12  ;;  %s23_s14 = int_to_ptr.vmem [resolvable:$true] %s22_s14 }
  0x17   :  { %s554_s17 = scalar_lea.hbm %s862_s3, 64 }
  0x18   :  { %p555_p8 = scmp.ne.s32.totalorder %s862_s3, %s554_s17  ;;  %p558_p9 = scmp.lt.u32.totalorder %s554_s17, %s862_s3 }
  0x1a   :  { %p560_p10 = pnand %p558_p9, %p555_p8 }
  0x1c   :  { %563 = shalt.err (!%p560_p10)
}
  0x1d   :  { %s564_s1 = scalar_lea.vmem %s57_s12, 64  ;;  %p569_p12 = scmp.lt.s32.totalorder %s57_s12, %s57_s12 }
  0x1e   :  { %p565_p11 = scmp.ne.s32.totalorder %s57_s12, %s564_s1  ;;  %p570_p13 = scmp.lt.s32.totalorder %s564_s1, %s564_s1 }
  0x20   :  { %p571_p0 = por %p570_p13, %p569_p12 }
  0x22   :  { %p572_p1 = pnand %p571_p0, %p565_p11 }
  0x24   :  { %575 = shalt.err (!%p572_p1)
}
  0x25   :  { %59 = dma.hbm_to_vmem [thread:$0]  %s862_s3, 64, %s57_s12, [#allocation9]  }
  0x26   :  { %s576_s26 = scalar_lea.hbm %s859_s0, 128 }
  0x27   :  { %p577_p2 = scmp.ne.s32.totalorder %s859_s0, %s576_s26  ;;  %p580_p3 = scmp.lt.u32.totalorder %s576_s26, %s859_s0 }
  0x29   :  { %p582_p4 = pnand %p580_p3, %p577_p2 }
  0x2b   :  { %585 = shalt.err (!%p582_p4)
}
  0x2c   :  { %s586_s9 = scalar_lea.vmem %s23_s14, 128  ;;  %p591_p6 = scmp.lt.s32.totalorder %s23_s14, %s23_s14 }
  0x2d   :  { %p587_p5 = scmp.ne.s32.totalorder %s23_s14, %s586_s9  ;;  %p592_p7 = scmp.lt.s32.totalorder %s586_s9, %s586_s9 }
  0x2f   :  { %p593_p8 = por %p592_p7, %p591_p6 }
  0x31   :  { %p594_p9 = pnand %p593_p8, %p587_p5 }
  0x33   :  { %597 = shalt.err (!%p594_p9)
}
  0x34   :  { %25 = dma.hbm_to_vmem [thread:$0]  %s859_s0, 128, %s23_s14, [#allocation3]  }
  0x35   :  { %s701_s11 = smov [#allocation7]   ;;  %s702_s13 = smov [#allocation10]  }
  0x36   :  { %s43_s12 = sshll.u32 %s701_s11, 4  ;;  %s65_s15 = sshll.u32 %s702_s13, 4  ;;  %s44_s12 = int_to_ptr.vmem [resolvable:$true] %s43_s12  ;;  %s66_s15 = int_to_ptr.vmem [resolvable:$true] %s65_s15 }
  0x37   :  { %s598_s18 = scalar_lea.hbm %s861_s2, 512 }
  0x38   :  { %p599_p10 = scmp.ne.s32.totalorder %s861_s2, %s598_s18  ;;  %p602_p11 = scmp.lt.u32.totalorder %s598_s18, %s861_s2 }
  0x3a   :  { %p604_p12 = pnand %p602_p11, %p599_p10 }
  0x3c   :  { %607 = shalt.err (!%p604_p12)
}
  0x3d   :  { %s608_s0 = scalar_lea.vmem %s44_s12, 512  ;;  %p613_p0 = scmp.lt.s32.totalorder %s44_s12, %s44_s12 }
  0x3e   :  { %p609_p13 = scmp.ne.s32.totalorder %s44_s12, %s608_s0  ;;  %p614_p1 = scmp.lt.s32.totalorder %s608_s0, %s608_s0 }
  0x40   :  { %p615_p2 = por %p614_p1, %p613_p0 }
  0x42   :  { %p616_p3 = pnand %p615_p2, %p609_p13 }
  0x44   :  { %619 = shalt.err (!%p616_p3)
}
  0x45   :  { %49 = dma.hbm_to_vmem [thread:$0]  %s861_s2, 512, %s44_s12, [#allocation6], %s697_s7, %s697_s7, %s698_s8  }
  0x46   :  { %s620_s25 = scalar_lea.hbm %s863_s4, 512 }
  0x47   :  { %p621_p4 = scmp.ne.s32.totalorder %s863_s4, %s620_s25  ;;  %p624_p5 = scmp.lt.u32.totalorder %s620_s25, %s863_s4 }
  0x49   :  { %p626_p6 = pnand %p624_p5, %p621_p4 }
  0x4b   :  { %629 = shalt.err (!%p626_p6)
}
  0x4c   :  { %s630_s30 = scalar_lea.vmem %s66_s15, 512  ;;  %p635_p8 = scmp.lt.s32.totalorder %s66_s15, %s66_s15 }
  0x4d   :  { %p631_p7 = scmp.ne.s32.totalorder %s66_s15, %s630_s30  ;;  %p636_p9 = scmp.lt.s32.totalorder %s630_s30, %s630_s30 }
  0x4f   :  { %p637_p10 = por %p636_p9, %p635_p8 }
  0x51   :  { %p638_p11 = pnand %p637_p10, %p631_p7 }
  0x53   :  { %641 = shalt.err (!%p638_p11)
}
  0x54   :  { %71 = dma.hbm_to_vmem [thread:$0]  %s863_s4, 512, %s66_s15, [#allocation9], %s697_s7, %s697_s7, %s698_s8  }
  0x55   :  { %s703_s3 = smov [#allocation11]   ;;  %s642_s13 = scalar_lea.hbm %s864_s5, 64 }
  0x56   :  { %s78_s10 = sshll.u32 %s703_s3, 4  ;;  %p643_p12 = scmp.ne.s32.totalorder %s864_s5, %s642_s13  ;;  %s79_s10 = int_to_ptr.vmem [resolvable:$true] %s78_s10 }
  0x57   :  { %p646_p13 = scmp.lt.u32.totalorder %s642_s13, %s864_s5 }
  0x59   :  { %p648_p0 = pnand %p646_p13, %p643_p12 }
  0x5b   :  { %651 = shalt.err (!%p648_p0)
}
  0x5c   :  { %s652_s20 = scalar_lea.vmem %s79_s10, 64  ;;  %p657_p2 = scmp.lt.s32.totalorder %s79_s10, %s79_s10 }
  0x5d   :  { %p653_p1 = scmp.ne.s32.totalorder %s79_s10, %s652_s20  ;;  %p658_p3 = scmp.lt.s32.totalorder %s652_s20, %s652_s20 }
  0x5f   :  { %p659_p4 = por %p658_p3, %p657_p2 }
  0x61   :  { %p660_p5 = pnand %p659_p4, %p653_p1 }
  0x63   :  { %663 = shalt.err (!%p660_p5)
}
  0x64   :  { %81 = dma.hbm_to_vmem [thread:$0]  %s864_s5, 64, %s79_s10, [#allocation12]  }
  0x65   :  { %686 = dma.done.wait [#allocation3], 128  }
  0x66   :  { %687 = vsyncadd [#allocation3], 4294967168 }
  0x67   :  { %688 = dma.done.wait [#allocation6], 640  }
  0x68   :  { %689 = vsyncadd [#allocation6], 4294966656 }
  0x69   :  { %690 = dma.done.wait [#allocation9], 576  }
  0x6a   :  { %691 = vsyncadd [#allocation9], 4294966720 }
  0x6b   :  { %692 = dma.done.wait [#allocation12], 64  }
  0x6c   :  { %693 = vsyncadd [#allocation12], 4294967232  ;;  %vm119_vm0 = vcmask 1045504   ;;  %v704_v0 = vmov 0.0   ;;  %vm705_vm1 = vmmov 0   ;;  %vm120_vm2 = vcmask 1046528  }
  0x6d   :  { %466 = vmatprep.subr.bf16.mxu1 %v704_v0  ;;  %484 = vmatprep.subr.bf16.mxu0 %v704_v0  ;;  %v706_v1 = vmov 65535   ;;  %v517_v4 = vld [vmem:[#allocation5] sm:$0x7f]   ;;  %v101_v5 = vld [vmem:[#allocation2] sm:$0xff]  ;;  %vm115_vm3 = vcmask 105472   ;;  %v518_v8 = vld [vmem:[#allocation7] sm:$0xff]   ;;  %v399_v57 = vlaneseq }
  0x6e   :  { %468 = vmatprep.mubr.msk.bf16.mxu1 %vm705_vm1, %v704_v0  ;;  %486 = vmatprep.mubr.msk.bf16.mxu0 %vm705_vm1, %v704_v0  ;;  %v121_v2 = vsel %vm119_vm0, 4294967295, %v706_v1  ;;  %v102_v7 = vpack.c.bf16 %v101_v5, %v101_v5  ;;  %v519_v9 = vld [vmem:[#allocation7 + $0x8] sm:$0xff]   ;;  %v520_v10 = vld [vmem:[#allocation7 + $0x10] sm:$0xff]   ;;  %v521_v11 = vld [vmem:[#allocation7 + $0x18] sm:$0xff]   ;;  %vm205_vm4 = vcmask 523264   ;;  %s707_s5 = smov 112  }
  0x6f   :  { %v122_v3 = vsel %vm120_vm2, %v121_v2, 0  ;;  %v434_v12 = vld [vmem:[#allocation11] ss:$0 sm:$0xff]  ;;  %v437_v20 = vld [vmem:[#allocation11 + $0x1] ss:$0 sm:$0xff]  ;;  %s708_s8 = smov 5  }
  0x70   :  { %v124_v6 = vand.u32 %v517_v4, %v122_v3  ;;  %v263_v29 = vld [vmem:[#allocation8] sm:$0xf]  ;;  %vm273_vm5 = vcmask 1043456   ;;  %s709_s15 = smov 115   ;;  %vm269_vm6 = vcmask 64512   ;;  %v522_v35 = vld [vmem:[#allocation10] sm:$0xff]  }
  0x71   :  { %v275_v30 = vsel %vm273_vm5, %v263_v29, 0  ;;  %v523_v37 = vld [vmem:[#allocation10 + $0x8] sm:$0xff]   ;;  %v524_v38 = vld [vmem:[#allocation10 + $0x10] sm:$0xff]   ;;  %v525_v39 = vld [vmem:[#allocation10 + $0x18] sm:$0xff]   ;;  %v400_v58 = vand.u32 127, %v399_v57  ;;  %s710_s21 = smov [#allocation13]  }
  0x72   :  { %467 = vmatpush3.bf16.msra.mxu1 %v124_v6  ;;  %485 = vmatpush3.bf16.msra.mxu0 %v275_v30  ;;  %v443_v40 = vld [vmem:[#allocation11 + $0x2] ss:$0 sm:$0xff]  ;;  %v445_v48 = vld [vmem:[#allocation11 + $0x3] ss:$0 sm:$0xff]  ;;  %s422_s1 = sshll.u32 %s710_s21, 4  ;;  %vm413_vm8 = vcmask 916480   ;;  %s423_s1 = int_to_ptr.vmem [resolvable:$true] %s422_s1 }
  0x73   :  { %472 = vmatprep.subr.bf16.mxu1 %v704_v0  ;;  %490 = vmatprep.subr.bf16.mxu0 %v704_v0  ;;  %vm401_vm7 = vcmp.lt.s32.totalorder %v400_v58, 6  ;;  %s664_s0 = scalar_lea.vmem %s423_s1, 128  ;;  %p669_p7 = scmp.lt.s32.totalorder %s423_s1, %s423_s1 }
  0x74   :  { %p665_p6 = scmp.ne.s32.totalorder %s423_s1, %s664_s0  ;;  %p670_p8 = scmp.lt.s32.totalorder %s664_s0, %s664_s0 }
  0x75   :  { %469 = vmatmul.mubr.msk.bf16.vlgmr.msra.gmra.mrb[0].mxu1 %vm115_vm3, %v102_v7 }
  0x76   :  { %473 = vmatpush3.bf16.msra.mxu1 %v518_v8  ;;  %480 = vmatprep.mubr.msk.bf16.mxu1 %vm705_vm1, %v704_v0  ;;  %p671_p9 = por %p670_p8, %p669_p7 }
  0x77   :  { %474 = vmatprep.subr.bf16.mxu1 %v704_v0 }
  0x78   :  { %p672_p10 = pnand %p671_p9, %p665_p6 }
  0x7a   :  { %475 = vmatpush3.bf16.msra.mxu1 %v519_v9 }
  0x7b   :  { %476 = vmatprep.subr.bf16.mxu1 %v704_v0 }
  0x7e   :  { %477 = vmatpush3.bf16.msra.mxu1 %v520_v10 }
  0x7f   :  { %478 = vmatprep.subr.bf16.mxu1 %v704_v0 }
  0x82   :  { %479 = vmatpush3.bf16.msra.mxu1 %v521_v11 }
 0x148   :  { %v160_v13 = vpop.f32.mrb[0].mxu1 }
 0x149   :  { %v161_v14 = vadd.f32 %v434_v12, %v160_v13  ;;  %v470_v15 = vpop.f32.mrb[1].mxu1 }
 0x14a   :  { %v163_v16 = vpop.f32.mrb[2].mxu1 }
 0x14b   :  { %v166_v17 = vmax.f32 %v161_v14, 0.0  ;;  %v471_v18 = vpop.f32.mrb[3].mxu1 }
 0x14d   :  { %v167_v19 = vpack.c.bf16 %v166_v17, %v166_v17 }
 0x14f   :  { %481 = vmatmul.mubr.msk.bf16.vlgmr.msra.gmra.mrb[4].mxu1 %vm205_vm4, %v167_v19 }
 0x222   :  { %v243_v21 = vpop.f32.mrb[4].mxu1 }
 0x223   :  { %v244_v22 = vadd.f32 %v437_v20, %v243_v21  ;;  %v482_v23 = vpop.f32.mrb[5].mxu1 }
 0x224   :  { %v246_v24 = vpop.f32.mrb[6].mxu1 }
 0x225   :  { %v249_v25 = vmul.f32 0.5, %v244_v22  ;;  %410 = vrot.lane.b32.xlu1 %v244_v22, %s707_s5  ;;  %v483_v26 = vpop.f32.mrb[7].mxu1 }
 0x227   :  { %v250_v27 = vmul.f32 1.442695, %v249_v25 }
 0x229   :  { %526 = vpow2.f32 %v250_v27 }
 0x233   :  { %v527_v28 = vpop.eup %526 }
 0x234   :  { %253 = vrot.lane.b32.xlu0 %v527_v28, %s708_s8 }
 0x297   :  { %v411_v60 = vpop.permute.xlu1 %410 }
 0x2a6   :  { %v254_v31 = vpop.permute.xlu0 %253 }
 0x2a7   :  { %v256_v32 = vmul.f32 %v254_v31, %v101_v5 }
 0x2a9   :  { %258 = vrot.lane.b32.xlu0 %v256_v32, %s709_s15 }
 0x31b   :  { %v259_v33 = vpop.permute.xlu0 %258 }
 0x31c   :  { %v261_v34 = vadd.f32 %v259_v33, %v244_v22 }
 0x31e   :  { %v262_v36 = vpack.c.bf16 %v261_v34, %v261_v34 }
 0x320   :  { %487 = vmatmul.mubr.msk.bf16.vlgmr.msra.gmra.mrb[0].mxu0 %vm269_vm6, %v262_v36 }
 0x321   :  { %491 = vmatpush3.bf16.msra.mxu0 %v522_v35  ;;  %498 = vmatprep.mubr.msk.bf16.mxu0 %vm705_vm1, %v704_v0 }
 0x322   :  { %492 = vmatprep.subr.bf16.mxu0 %v704_v0 }
 0x325   :  { %493 = vmatpush3.bf16.msra.mxu0 %v523_v37 }
 0x326   :  { %494 = vmatprep.subr.bf16.mxu0 %v704_v0 }
 0x329   :  { %495 = vmatpush3.bf16.msra.mxu0 %v524_v38 }
 0x32a   :  { %496 = vmatprep.subr.bf16.mxu0 %v704_v0 }
 0x32d   :  { %497 = vmatpush3.bf16.msra.mxu0 %v525_v39 }
 0x3f3   :  { %v311_v41 = vpop.f32.mrb[0].mxu0 }
 0x3f4   :  { %v312_v42 = vadd.f32 %v443_v40, %v311_v41  ;;  %v488_v43 = vpop.f32.mrb[1].mxu0 }
 0x3f5   :  { %v314_v44 = vpop.f32.mrb[2].mxu0 }
 0x3f6   :  { %v317_v45 = vmax.f32 %v312_v42, 0.0  ;;  %v489_v46 = vpop.f32.mrb[3].mxu0 }
 0x3f8   :  { %v318_v47 = vpack.c.bf16 %v317_v45, %v317_v45 }
 0x3fa   :  { %499 = vmatmul.mubr.msk.bf16.vlgmr.msra.gmra.mrb[4].mxu0 %vm205_vm4, %v318_v47 }
 0x4cd   :  { %v393_v49 = vpop.f32.mrb[4].mxu0 }
 0x4ce   :  { %v394_v50 = vadd.f32 %v445_v48, %v393_v49  ;;  %v500_v51 = vpop.f32.mrb[5].mxu0 }
 0x4cf   :  { %v396_v52 = vpop.f32.mrb[6].mxu0 }
 0x4d0   :  { %v451_v53 = vmul.f32 -1.442695, %v394_v50  ;;  %v501_v54 = vpop.f32.mrb[7].mxu0 }
 0x4d2   :  { %528 = vpow2.f32 %v451_v53 }
 0x4dc   :  { %v529_v55 = vpop.eup %528 }
 0x4dd   :  { %v405_v56 = vadd.f32 1.0, %v529_v55 }
 0x4df   :  { %530 = vrcp.f32 %v405_v56 }
 0x4e9   :  { %v531_v59 = vpop.eup %530 }
 0x4ea   :  { %v408_v61 = vsel %vm401_vm7, %v531_v59, %v394_v50 }
 0x4eb   :  { %v414_v62 = vsel %vm413_vm8, %v408_v61, %v411_v60 }
 0x4ec   :  { %415 = vst [vmem:[#allocation13] sm:$0xff] %v414_v62 }
 0x4ed   :  { %675 = shalt.err (!%p672_p10)
}
 0x4ee   :  { %s676_s23 = scalar_lea.hbm %s865_s6, 128 }
 0x4ef   :  { %p677_p11 = scmp.ne.s32.totalorder %s865_s6, %s676_s23  ;;  %p680_p12 = scmp.lt.u32.totalorder %s676_s23, %s865_s6 }
 0x4f1   :  { %p682_p13 = pnand %p680_p12, %p677_p11 }
 0x4f3   :  { %685 = shalt.err (!%p682_p13)
}
 0x4f4   :  { %425 = dma.vmem_to_hbm [thread:$0]  %s423_s1, 128, %s865_s6, [#allocation4]  }
 0x4f5   :  { %694 = dma.done.wait [#allocation4], 128  }
 0x4f6   :  { %695 = vsyncadd [#allocation4], 4294967168 }
 0x4f7   :  { %429 = vsyncpa [#allocation3], 1 }
 0x4f8   :  { %430 = vsyncpa [#allocation6], 1 }
 0x4f9   :  { %431 = vsyncpa [#allocation9], 1 }
 0x4fa   :  { %432 = vsyncpa [#allocation12], 1 }
 0x4fb   :  { %433 = vsyncpa [#allocation4], 1 }

</bundles_post_ra>
